<compile_context>
chip_gen: v5e
topology: v5e:2x2
jax: 0.10.0
libtpu: 0.0.40
codegen_flags: <defaults>
</compile_context>

<pallas_src>
import jax
import jax.numpy as jnp
from jax.experimental import pallas as pl
from jax.experimental.pallas import tpu as pltpu

# --------------------------------------------------------------------------
# Config (matches ProposalModule.__init__ arguments)
# --------------------------------------------------------------------------
NUM_CLASS = 4
NUM_PROPOSAL = 16
SEED_FEAT_DIM = 16
RADIUS = 0.3
NSAMPLE = 8
NSAMPLE_SUB = 4          # TODO(synk): nsample_sub sub-grouping path of
                         # PointnetSAModuleVotes not reproduced (source not given).
USE_FPS = False
USE_GEO_FEATURES = True
USE_BINARY_MASK = False  # TODO(synk): binary-mask sub-MLP of PointnetSAModuleVotes
                         # not reproduced (source not given); mask output is None.

BATCH = 2
NUM_SEED = 64

C_IN_SA = SEED_FEAT_DIM + 3                         # use_xyz=True -> 19
C_IN_PAD = 32                                       # lane-friendly padding of 19
C_HEAD_OUT = (2 + 7 + NUM_CLASS) if USE_GEO_FEATURES else (2 + 5 + NUM_CLASS)
C_OUT_PAD = 128                                     # lane-dense head output
BN_EPS = 1e-5


# --------------------------------------------------------------------------
# Fused Pallas kernel: SA shared-MLP + max-pool + proposal head
# --------------------------------------------------------------------------
def fused_proposal_kernel(x_ref, w1_ref, w_ref, b_ref, out_ref):
    """Inputs (all full-array VMEM blocks):
         x_ref  : (NSAMPLE*G, C_IN_PAD) bf16, SAMPLE-MAJOR rows (s*G + g)
         w1_ref : (C_IN_PAD, 128)       bf16  (SA layer 1, BN folded)
         w_ref  : (5, 128, 128)         bf16  [w2, w3, hw1, hw2, hw3]
         b_ref  : (6, 128)              f32   [b1, b2, b3, hb1, hb2, hb3]
       Output:
         out_ref: (2*G, 128) f32 — rows [0:G] pooled SA features,
                                   rows [G:2G] head output (first C_HEAD_OUT lanes valid)
    """
    x = x_ref[...]                                   # (ns*G, 32) bf16
    g = x.shape[0] // NSAMPLE

    # ---- SA shared MLP (BN folded), bf16 matmul / f32 accumulate.
    #      bf16 cast fused into the ReLU for layers 1-2; layer 3 stays f32
    #      because the pooled result is a returned feature.
    h = jnp.maximum(
        jnp.dot(x, w1_ref[...], preferred_element_type=jnp.float32)
        + b_ref[0:1, :], 0.0).astype(jnp.bfloat16)
    h = jnp.maximum(
        jnp.dot(h, w_ref[0], preferred_element_type=jnp.float32)
        + b_ref[1:2, :], 0.0).astype(jnp.bfloat16)
    h = jnp.maximum(
        jnp.dot(h, w_ref[1], preferred_element_type=jnp.float32)
        + b_ref[2:3, :], 0.0)                        # (ns*G, 128) f32

    # ---- max over the nsample grouped points: sample-major rows -> 7 VPU maxima
    #      over contiguous (G,128) blocks, no cross-sublane relayout.
    pooled = h[0:g, :]
    for s in range(1, NSAMPLE):
        pooled = jnp.maximum(pooled, h[s * g:(s + 1) * g, :])
    out_ref[0:g, :] = pooled                         # (G,128) f32

    # ---- head: relu(bn1(conv1)) -> relu(bn2(conv2)) -> conv3 (BN folded) ----
    n = jnp.maximum(
        jnp.dot(pooled.astype(jnp.bfloat16), w_ref[2],
                preferred_element_type=jnp.float32) + b_ref[3:4, :],
        0.0).astype(jnp.bfloat16)
    n = jnp.maximum(
        jnp.dot(n, w_ref[3], preferred_element_type=jnp.float32)
        + b_ref[4:5, :], 0.0).astype(jnp.bfloat16)
    out_ref[g:2 * g, :] = (
        jnp.dot(n, w_ref[4], preferred_element_type=jnp.float32)
        + b_ref[5:6, :])


def run_fused(grouped_sm, params):
    """grouped_sm: (NSAMPLE*G, C_IN_PAD) bf16, sample-major rows.
    Returns (2*G, 128) f32: rows [0:G] pooled features, rows [G:2G] head output."""
    G = grouped_sm.shape[0] // NSAMPLE
    w1, w_stack, b_stack = params["w1"], params["w_stack"], params["b_stack"]
    return pl.pallas_call(
        fused_proposal_kernel,
        out_shape=jax.ShapeDtypeStruct((2 * G, 128), jnp.float32),
        grid=(1,),                       # whole problem fits in VMEM; one step
        in_specs=[
            pl.BlockSpec(grouped_sm.shape, lambda i: (0, 0)),
            pl.BlockSpec(w1.shape, lambda i: (0, 0)),
            pl.BlockSpec(w_stack.shape, lambda i: (0, 0, 0)),
            pl.BlockSpec(b_stack.shape, lambda i: (0, 0)),
        ],
        out_specs=pl.BlockSpec((2 * G, 128), lambda i: (0, 0)),
        compiler_params=pltpu.CompilerParams(
            dimension_semantics=("arbitrary",)),
    )(grouped_sm, w1, w_stack, b_stack)


# --------------------------------------------------------------------------
# Plain-JAX glue: sampling / ball query / grouping
# --------------------------------------------------------------------------
def ball_query(new_xyz, xyz, radius, nsample):
    """First-`nsample` indices within `radius` of each center (CUDA semantics)."""
    N = xyz.shape[1]
    d2 = jnp.sum((new_xyz[:, :, None, :] - xyz[:, None, :, :]) ** 2, axis=-1)
    in_ball = d2 < radius * radius
    key = jnp.where(in_ball, jnp.arange(N, dtype=jnp.int32)[None, None, :], N)
    # smallest `nsample` keys == first `nsample` in-ball indices (top_k beats sort)
    neg_vals, _ = jax.lax.top_k(-key, nsample)
    order = -neg_vals
    first = order[:, :, :1]              # center itself always within radius (d2=0)
    idx = jnp.where(order >= N, first, order)
    return idx.astype(jnp.int32)


def proposal_module_forward(point_xyz, point_features, sample_inds, params):
    B, N, _ = point_xyz.shape
    npz = NUM_PROPOSAL
    G = B * npz
    bidx2 = jnp.arange(B)[:, None]
    bidx3 = jnp.arange(B)[:, None, None]

    # vote_aggregation (PointnetSAModuleVotes, use_fps=False path)
    proposal_xyz = point_xyz[bidx2, sample_inds]                    # (B, np, 3)
    proposal_idx = ball_query(proposal_xyz, point_xyz, RADIUS, NSAMPLE)
    grouped_xyz = (point_xyz[bidx3, proposal_idx]
                   - proposal_xyz[:, :, None, :]) / RADIUS          # normalize_xyz
    feat_t = jnp.transpose(point_features, (0, 2, 1))               # (B, N, C)
    grouped_feat = feat_t[bidx3, proposal_idx]                      # (B, np, ns, C)
    grouped = jnp.concatenate([grouped_xyz, grouped_feat], axis=-1) # use_xyz=True
    grouped = jnp.pad(grouped,
                      ((0, 0), (0, 0), (0, 0), (0, C_IN_PAD - C_IN_SA)))
    # Sample-major 2-D layout (row = s*G + g) so the in-kernel max-pool is over
    # contiguous row blocks; cast to bf16 here (halves the activation DMA).
    grouped_sm = jnp.transpose(grouped, (2, 0, 1, 3)).reshape(
        NSAMPLE * G, C_IN_PAD).astype(jnp.bfloat16)

    # ---- fused Pallas hot path ----
    out = run_fused(grouped_sm, params)                             # (2G, 128)
    agg = out[:G]                                                   # (G, 128)
    net_flat = out[G:, :C_HEAD_OUT]                                 # (G, 13)

    proposal_features = jnp.transpose(agg.reshape(B, npz, 128), (0, 2, 1))
    net = jnp.transpose(net_flat.reshape(B, npz, C_HEAD_OUT), (0, 2, 1))

    proposal_objectness_scores = net[:, 0:2, :]
    if USE_GEO_FEATURES:
        proposal_aggregation_features = net[:, 2:9, :]
        proposal_sematic_class = net[:, 9:9 + NUM_CLASS, :]
    else:
        proposal_aggregation_features = net[:, 2:7, :]
        proposal_sematic_class = net[:, 7:7 + NUM_CLASS, :]

    proposal_binary_mask = None
    return (proposal_binary_mask, proposal_sematic_class,
            proposal_aggregation_features, proposal_objectness_scores,
            proposal_xyz, proposal_idx, proposal_features)


proposal_module_forward_jit = jax.jit(proposal_module_forward)


# --------------------------------------------------------------------------
# Deterministic parameter init.  BatchNorm (eval mode) is folded directly into
# the weight matrices (w' = w * scale) and biases (conv_bias*scale + bn_bias).
# Weights are packed for the kernel: w1 (32,128) bf16 separate; the five
# 128x128 matrices stacked into one (5,128,128) bf16 tensor; the six biases
# packed into one (6,128) f32 tensor.
# --------------------------------------------------------------------------
def _bn_fold(key, c):
    k1, k2, k3, k4 = jax.random.split(key, 4)
    gamma = 1.0 + 0.1 * jax.random.normal(k1, (1, c), jnp.float32)
    beta = 0.1 * jax.random.normal(k2, (1, c), jnp.float32)
    mean = 0.05 * jax.random.normal(k3, (1, c), jnp.float32)
    var = 1.0 + 0.1 * jnp.abs(jax.random.normal(k4, (1, c), jnp.float32))
    scale = gamma / jnp.sqrt(var + BN_EPS)
    bias = beta - mean * scale
    return scale, bias


def make_params(key):
    ks = jax.random.split(key, 16)
    ws, bs = [], []

    # SA shared MLP: [C_IN_SA, 128, 128, 128], conv2d(1x1, no bias) + BN + relu
    dims = [C_IN_SA, 128, 128, 128]
    for li in range(3):
        cin, cout = dims[li], dims[li + 1]
        w = 0.1 * jax.random.normal(ks[li], (cin, cout), jnp.float32)
        s, b = _bn_fold(ks[3 + li], cout)
        wf = w * s                                   # fold BN scale into W
        if li == 0:                                  # pad 19 -> 32 input channels
            wf = jnp.pad(wf, ((0, C_IN_PAD - cin), (0, 0)))
        ws.append(wf)
        bs.append(b)

    # Head conv1/bn1 and conv2/bn2 (conv bias folded through BN: cb*s + b)
    for li in range(2):
        w = 0.1 * jax.random.normal(ks[6 + li], (128, 128), jnp.float32)
        cb = 0.05 * jax.random.normal(ks[8 + li], (1, 128), jnp.float32)
        s, b = _bn_fold(ks[10 + li], 128)
        ws.append(w * s)
        bs.append(cb * s + b)

    # Head conv3 (no BN); pad output channels 13 -> 128 for lane-dense stores
    w3 = 0.1 * jax.random.normal(ks[12], (128, C_HEAD_OUT), jnp.float32)
    b3 = 0.05 * jax.random.normal(ks[13], (1, C_HEAD_OUT), jnp.float32)
    ws.append(jnp.pad(w3, ((0, 0), (0, C_OUT_PAD - C_HEAD_OUT))))
    bs.append(jnp.pad(b3, ((0, 0), (0, C_OUT_PAD - C_HEAD_OUT))))

    return {
        "w1": ws[0].astype(jnp.bfloat16),                         # (32, 128)
        "w_stack": jnp.stack(ws[1:], axis=0).astype(jnp.bfloat16),  # (5, 128, 128)
        "b_stack": jnp.concatenate(bs, axis=0),                   # (6, 128) f32
    }


# --------------------------------------------------------------------------
if __name__ == "__main__":
    key = jax.random.PRNGKey(0)
    k_xyz, k_feat, k_inds, k_par = jax.random.split(key, 4)

    point_xyz = jax.random.normal(k_xyz, (BATCH, NUM_SEED, 3), jnp.float32)
    point_features = jax.random.normal(
        k_feat, (BATCH, SEED_FEAT_DIM, NUM_SEED), jnp.float32)
    # torch.randint(0, num_seed, (B, num_proposal)) analogue (use_fps=False path)
    sample_inds = jax.random.randint(
        k_inds, (BATCH, NUM_PROPOSAL), 0, NUM_SEED, jnp.int32)

    params = make_params(k_par)

    outs = proposal_module_forward_jit(point_xyz, point_features,
                                       sample_inds, params)
    for o in outs:
        if o is not None:
            jax.block_until_ready(o)

    (mask, sem, agg_feat, obj, pxyz, pidx, pfeat) = outs
    assert sem.shape == (BATCH, NUM_CLASS, NUM_PROPOSAL)
    assert agg_feat.shape == (BATCH, 7, NUM_PROPOSAL)
    assert obj.shape == (BATCH, 2, NUM_PROPOSAL)
    assert pxyz.shape == (BATCH, NUM_PROPOSAL, 3)
    assert pidx.shape == (BATCH, NUM_PROPOSAL, NSAMPLE)
    assert pfeat.shape == (BATCH, 128, NUM_PROPOSAL)
    assert bool(jnp.all(jnp.isfinite(sem))) and bool(jnp.all(jnp.isfinite(pfeat)))
    print("KERNEL_OK")
</pallas_src>

<mosaic_0001>
module attributes {stable_mosaic.version = 11 : i64} {
  func.func @fused_proposal_kernel(%arg0: i32, %arg1: memref<256x32xbf16, #tpu.memory_space<vmem>>, %arg2: memref<32x128xbf16, #tpu.memory_space<vmem>>, %arg3: memref<5x128x128xbf16, #tpu.memory_space<vmem>>, %arg4: memref<6x128xf32, #tpu.memory_space<vmem>>, %arg5: memref<64x128xf32, #tpu.memory_space<vmem>>) attributes {dimension_semantics = [#tpu.dimension_semantics<arbitrary>], iteration_bounds = array<i64: 1>, scalar_prefetch = 0 : i64, scratch_operands = 0 : i64, tpu.core_type = #tpu.core_type<tc>, window_params = [{pipeline_mode = #tpu.pipeline_mode<synchronous>, transform_indices = @transform_0, window_bounds = array<i64: 256, 32>}, {pipeline_mode = #tpu.pipeline_mode<synchronous>, transform_indices = @transform_1, window_bounds = array<i64: 32, 128>}, {pipeline_mode = #tpu.pipeline_mode<synchronous>, transform_indices = @transform_2, window_bounds = array<i64: 5, 128, 128>}, {pipeline_mode = #tpu.pipeline_mode<synchronous>, transform_indices = @transform_3, window_bounds = array<i64: 6, 128>}, {pipeline_mode = #tpu.pipeline_mode<synchronous>, transform_indices = @transform_4, window_bounds = array<i64: 64, 128>}]} {
    %c0 = arith.constant 0 : index
    %c0_0 = arith.constant 0 : index
    %0 = vector.load %arg1[%c0, %c0_0] : memref<256x32xbf16, #tpu.memory_space<vmem>>, vector<256x32xbf16>
    %c0_1 = arith.constant 0 : index
    %c0_2 = arith.constant 0 : index
    %1 = vector.load %arg2[%c0_1, %c0_2] : memref<32x128xbf16, #tpu.memory_space<vmem>>, vector<32x128xbf16>
    %cst = arith.constant dense<0.000000e+00> : vector<256x128xf32>
    %2 = tpu.matmul %0, %1, %cst {dimension_numbers = #tpu.dot_dimension_numbers<[1], [0], [0], [1], [0, 0, 1, 1], [], []>} : vector<256x32xbf16>, vector<32x128xbf16>, vector<256x128xf32> -> vector<256x128xf32>
    %c0_3 = arith.constant 0 : index
    %c0_4 = arith.constant 0 : index
    %3 = vector.load %arg4[%c0_3, %c0_4] : memref<6x128xf32, #tpu.memory_space<vmem>>, vector<1x128xf32>
    %4 = vector.broadcast %3 : vector<1x128xf32> to vector<256x128xf32>
    %5 = arith.addf %2, %4 : vector<256x128xf32>
    %cst_5 = arith.constant 0.000000e+00 : f32
    %6 = vector.broadcast %cst_5 : f32 to vector<256x128xf32>
    %7 = arith.maximumf %5, %6 : vector<256x128xf32>
    %8 = arith.truncf %7 : vector<256x128xf32> to vector<256x128xbf16>
    %c0_6 = arith.constant 0 : index
    %c0_7 = arith.constant 0 : index
    %c0_8 = arith.constant 0 : index
    %9 = vector.load %arg3[%c0_6, %c0_7, %c0_8] : memref<5x128x128xbf16, #tpu.memory_space<vmem>>, vector<1x128x128xbf16>
    %10 = vector.shape_cast %9 : vector<1x128x128xbf16> to vector<128x128xbf16>
    %cst_9 = arith.constant dense<0.000000e+00> : vector<256x128xf32>
    %11 = tpu.matmul %8, %10, %cst_9 {dimension_numbers = #tpu.dot_dimension_numbers<[1], [0], [0], [1], [0, 0, 1, 1], [], []>} : vector<256x128xbf16>, vector<128x128xbf16>, vector<256x128xf32> -> vector<256x128xf32>
    %c1 = arith.constant 1 : index
    %c0_10 = arith.constant 0 : index
    %12 = vector.load %arg4[%c1, %c0_10] : memref<6x128xf32, #tpu.memory_space<vmem>>, vector<1x128xf32>
    %13 = vector.broadcast %12 : vector<1x128xf32> to vector<256x128xf32>
    %14 = arith.addf %11, %13 : vector<256x128xf32>
    %cst_11 = arith.constant 0.000000e+00 : f32
    %15 = vector.broadcast %cst_11 : f32 to vector<256x128xf32>
    %16 = arith.maximumf %14, %15 : vector<256x128xf32>
    %17 = arith.truncf %16 : vector<256x128xf32> to vector<256x128xbf16>
    %c1_12 = arith.constant 1 : index
    %c0_13 = arith.constant 0 : index
    %c0_14 = arith.constant 0 : index
    %18 = vector.load %arg3[%c1_12, %c0_13, %c0_14] : memref<5x128x128xbf16, #tpu.memory_space<vmem>>, vector<1x128x128xbf16>
    %19 = vector.shape_cast %18 : vector<1x128x128xbf16> to vector<128x128xbf16>
    %cst_15 = arith.constant dense<0.000000e+00> : vector<256x128xf32>
    %20 = tpu.matmul %17, %19, %cst_15 {dimension_numbers = #tpu.dot_dimension_numbers<[1], [0], [0], [1], [0, 0, 1, 1], [], []>} : vector<256x128xbf16>, vector<128x128xbf16>, vector<256x128xf32> -> vector<256x128xf32>
    %c2 = arith.constant 2 : index
    %c0_16 = arith.constant 0 : index
    %21 = vector.load %arg4[%c2, %c0_16] : memref<6x128xf32, #tpu.memory_space<vmem>>, vector<1x128xf32>
    %22 = vector.broadcast %21 : vector<1x128xf32> to vector<256x128xf32>
    %23 = arith.addf %20, %22 : vector<256x128xf32>
    %cst_17 = arith.constant 0.000000e+00 : f32
    %24 = vector.broadcast %cst_17 : f32 to vector<256x128xf32>
    %25 = arith.maximumf %23, %24 : vector<256x128xf32>
    %26 = vector.extract_strided_slice %25 {offsets = [0, 0], sizes = [32, 128], strides = [1, 1]} : vector<256x128xf32> to vector<32x128xf32>
    %27 = vector.extract_strided_slice %25 {offsets = [32, 0], sizes = [32, 128], strides = [1, 1]} : vector<256x128xf32> to vector<32x128xf32>
    %28 = arith.maximumf %26, %27 : vector<32x128xf32>
    %29 = vector.extract_strided_slice %25 {offsets = [64, 0], sizes = [32, 128], strides = [1, 1]} : vector<256x128xf32> to vector<32x128xf32>
    %30 = arith.maximumf %28, %29 : vector<32x128xf32>
    %31 = vector.extract_strided_slice %25 {offsets = [96, 0], sizes = [32, 128], strides = [1, 1]} : vector<256x128xf32> to vector<32x128xf32>
    %32 = arith.maximumf %30, %31 : vector<32x128xf32>
    %33 = vector.extract_strided_slice %25 {offsets = [128, 0], sizes = [32, 128], strides = [1, 1]} : vector<256x128xf32> to vector<32x128xf32>
    %34 = arith.maximumf %32, %33 : vector<32x128xf32>
    %35 = vector.extract_strided_slice %25 {offsets = [160, 0], sizes = [32, 128], strides = [1, 1]} : vector<256x128xf32> to vector<32x128xf32>
    %36 = arith.maximumf %34, %35 : vector<32x128xf32>
    %37 = vector.extract_strided_slice %25 {offsets = [192, 0], sizes = [32, 128], strides = [1, 1]} : vector<256x128xf32> to vector<32x128xf32>
    %38 = arith.maximumf %36, %37 : vector<32x128xf32>
    %39 = vector.extract_strided_slice %25 {offsets = [224, 0], sizes = [32, 128], strides = [1, 1]} : vector<256x128xf32> to vector<32x128xf32>
    %40 = arith.maximumf %38, %39 : vector<32x128xf32>
    %c0_18 = arith.constant 0 : index
    %c0_19 = arith.constant 0 : index
    %41 = vector.load %arg5[%c0_18, %c0_19] : memref<64x128xf32, #tpu.memory_space<vmem>>, vector<32x128xf32>
    tpu.vector_store %arg5[%c0_18, %c0_19], %40 {strides = array<i32>} : memref<64x128xf32, #tpu.memory_space<vmem>>, vector<32x128xf32>,
    %42 = arith.truncf %40 : vector<32x128xf32> to vector<32x128xbf16>
    %c2_20 = arith.constant 2 : index
    %c0_21 = arith.constant 0 : index
    %c0_22 = arith.constant 0 : index
    %43 = vector.load %arg3[%c2_20, %c0_21, %c0_22] : memref<5x128x128xbf16, #tpu.memory_space<vmem>>, vector<1x128x128xbf16>
    %44 = vector.shape_cast %43 : vector<1x128x128xbf16> to vector<128x128xbf16>
    %cst_23 = arith.constant dense<0.000000e+00> : vector<32x128xf32>
    %45 = tpu.matmul %42, %44, %cst_23 {dimension_numbers = #tpu.dot_dimension_numbers<[1], [0], [0], [1], [0, 0, 1, 1], [], []>} : vector<32x128xbf16>, vector<128x128xbf16>, vector<32x128xf32> -> vector<32x128xf32>
    %c3 = arith.constant 3 : index
    %c0_24 = arith.constant 0 : index
    %46 = vector.load %arg4[%c3, %c0_24] : memref<6x128xf32, #tpu.memory_space<vmem>>, vector<1x128xf32>
    %47 = vector.broadcast %46 : vector<1x128xf32> to vector<32x128xf32>
    %48 = arith.addf %45, %47 : vector<32x128xf32>
    %cst_25 = arith.constant 0.000000e+00 : f32
    %49 = vector.broadcast %cst_25 : f32 to vector<32x128xf32>
    %50 = arith.maximumf %48, %49 : vector<32x128xf32>
    %51 = arith.truncf %50 : vector<32x128xf32> to vector<32x128xbf16>
    %c3_26 = arith.constant 3 : index
    %c0_27 = arith.constant 0 : index
    %c0_28 = arith.constant 0 : index
    %52 = vector.load %arg3[%c3_26, %c0_27, %c0_28] : memref<5x128x128xbf16, #tpu.memory_space<vmem>>, vector<1x128x128xbf16>
    %53 = vector.shape_cast %52 : vector<1x128x128xbf16> to vector<128x128xbf16>
    %cst_29 = arith.constant dense<0.000000e+00> : vector<32x128xf32>
    %54 = tpu.matmul %51, %53, %cst_29 {dimension_numbers = #tpu.dot_dimension_numbers<[1], [0], [0], [1], [0, 0, 1, 1], [], []>} : vector<32x128xbf16>, vector<128x128xbf16>, vector<32x128xf32> -> vector<32x128xf32>
    %c4 = arith.constant 4 : index
    %c0_30 = arith.constant 0 : index
    %55 = vector.load %arg4[%c4, %c0_30] : memref<6x128xf32, #tpu.memory_space<vmem>>, vector<1x128xf32>
    %56 = vector.broadcast %55 : vector<1x128xf32> to vector<32x128xf32>
    %57 = arith.addf %54, %56 : vector<32x128xf32>
    %cst_31 = arith.constant 0.000000e+00 : f32
    %58 = vector.broadcast %cst_31 : f32 to vector<32x128xf32>
    %59 = arith.maximumf %57, %58 : vector<32x128xf32>
    %60 = arith.truncf %59 : vector<32x128xf32> to vector<32x128xbf16>
    %c4_32 = arith.constant 4 : index
    %c0_33 = arith.constant 0 : index
    %c0_34 = arith.constant 0 : index
    %61 = vector.load %arg3[%c4_32, %c0_33, %c0_34] : memref<5x128x128xbf16, #tpu.memory_space<vmem>>, vector<1x128x128xbf16>
    %62 = vector.shape_cast %61 : vector<1x128x128xbf16> to vector<128x128xbf16>
    %cst_35 = arith.constant dense<0.000000e+00> : vector<32x128xf32>
    %63 = tpu.matmul %60, %62, %cst_35 {dimension_numbers = #tpu.dot_dimension_numbers<[1], [0], [0], [1], [0, 0, 1, 1], [], []>} : vector<32x128xbf16>, vector<128x128xbf16>, vector<32x128xf32> -> vector<32x128xf32>
    %c5 = arith.constant 5 : index
    %c0_36 = arith.constant 0 : index
    %64 = vector.load %arg4[%c5, %c0_36] : memref<6x128xf32, #tpu.memory_space<vmem>>, vector<1x128xf32>
    %65 = vector.broadcast %64 : vector<1x128xf32> to vector<32x128xf32>
    %66 = arith.addf %63, %65 : vector<32x128xf32>
    %c32 = arith.constant 32 : index
    %c0_37 = arith.constant 0 : index
    %67 = vector.load %arg5[%c32, %c0_37] : memref<64x128xf32, #tpu.memory_space<vmem>>, vector<32x128xf32>
    tpu.vector_store %arg5[%c32, %c0_37], %66 {strides = array<i32>} : memref<64x128xf32, #tpu.memory_space<vmem>>, vector<32x128xf32>,
    return
  }
  func.func @transform_0(%arg0: i32) -> (i32, i32) {
    %c0_i32 = arith.constant 0 : i32
    %c0_i32_0 = arith.constant 0 : i32
    %c0_i32_1 = arith.constant 0 : i32
    return %c0_i32, %c0_i32_0 : i32, i32
  }
  func.func @transform_1(%arg0: i32) -> (i32, i32) {
    %c0_i32 = arith.constant 0 : i32
    %c0_i32_0 = arith.constant 0 : i32
    %c0_i32_1 = arith.constant 0 : i32
    return %c0_i32, %c0_i32_0 : i32, i32
  }
  func.func @transform_2(%arg0: i32) -> (i32, i32, i32) {
    %c0_i32 = arith.constant 0 : i32
    %c0_i32_0 = arith.constant 0 : i32
    %c0_i32_1 = arith.constant 0 : i32
    %c0_i32_2 = arith.constant 0 : i32
    return %c0_i32, %c0_i32_0, %c0_i32_1 : i32, i32, i32
  }
  func.func @transform_3(%arg0: i32) -> (i32, i32) {
    %c0_i32 = arith.constant 0 : i32
    %c0_i32_0 = arith.constant 0 : i32
    %c0_i32_1 = arith.constant 0 : i32
    return %c0_i32, %c0_i32_0 : i32, i32
  }
  func.func @transform_4(%arg0: i32) -> (i32, i32) {
    %c0_i32 = arith.constant 0 : i32
    %c0_i32_0 = arith.constant 0 : i32
    %c0_i32_1 = arith.constant 0 : i32
    return %c0_i32, %c0_i32_0 : i32, i32
  }
}

</mosaic_0001>

<bundles_post_ra>
// kernel: proposal_module_forward.1
= control target key start
LH: loop header
LB: loop body
LE: loop exit
PB: predicated region body
PF: predicated region fallthrough
CT: control target
= control target key end

     0   :  { %vm148_vm0 = vcmask 261120   ;;  %s1800_s1 = inlined_call_operand.vmem [shape: bf16[32,128], index: 1, kind: input, shape index: {}]   ;;  %s1801_s3 = inlined_call_operand.vmem [shape: f32[6,128], index: 3, kind: input, shape index: {}]   ;;  %s1802_s0 = inlined_call_operand.vmem [shape: bf16[256,32], index: 0, kind: input, shape index: {}]   ;;  %s1803_s2 = inlined_call_operand.vmem [shape: bf16[5,128,128], index: 2, kind: input, shape index: {}]   ;;  %s1804_s4 = inlined_call_operand.vmem [shape: f32[64,128], index: 4, kind: output, shape index: {}]  }
   0x1   :  { %v1366_v0 = vld [vmem:[%s1800_s1 + $0x8] sm:$0xff]  ;;  %v1365_v1 = vld [vmem:[%s1800_s1] sm:$0xff]  ;;  %v1351_v4 = vld [vmem:[%s1802_s0 + $0x10] sm:$0xff] }
   0x2   :  { %203 = vmatpush.bf16.msra.mxu0 %v1366_v0  ;;  %v1349_v2 = vld [vmem:[%s1802_s0] sm:$0xff]  ;;  %v1350_v3 = vld [vmem:[%s1802_s0 + $0x8] sm:$0xff]  ;;  %v1352_v5 = vld [vmem:[%s1802_s0 + $0x18] sm:$0xff] }
   0x3   :  { %v1353_v6 = vld [vmem:[%s1802_s0 + $0x20] sm:$0xff]  ;;  %v1374_v7 = vld [vmem:[%s1803_s2 + $0x38] sm:$0xff]  ;;  %v1354_v8 = vld [vmem:[%s1802_s0 + $0x28] sm:$0xff] }
   0x4   :  { %400 = vmatpush.bf16.msra.mxu1 %v1374_v7  ;;  %1407 = vmatpush.bf16.msra.mxu3 %v1374_v7  ;;  %v1373_v9 = vld [vmem:[%s1803_s2 + $0x30] sm:$0xff]  ;;  %v1372_v10 = vld [vmem:[%s1803_s2 + $0x28] sm:$0xff]  ;;  %v1371_v11 = vld [vmem:[%s1803_s2 + $0x20] sm:$0xff] }
   0x5   :  { %v1370_v12 = vld [vmem:[%s1803_s2 + $0x18] sm:$0xff]  ;;  %v1355_v13 = vld [vmem:[%s1802_s0 + $0x30] sm:$0xff]  ;;  %v1368_v15 = vld [vmem:[%s1803_s2 + $0x8] sm:$0xff] }
   0x6   :  { %204 = vmatpush.bf16.msra.mxu0 %v1365_v1  ;;  %v1369_v14 = vld [vmem:[%s1803_s2 + $0x10] sm:$0xff]  ;;  %v1367_v16 = vld [vmem:[%s1803_s2] sm:$0xff]  ;;  %v1356_v17 = vld [vmem:[%s1802_s0 + $0x38] sm:$0xff] }
   0x7   :  { %v1357_v18 = vld [vmem:[%s1802_s0 + $0x40] sm:$0xff]  ;;  %v1358_v27 = vld [vmem:[%s1802_s0 + $0x48] sm:$0xff]  ;;  %v1359_v35 = vld [vmem:[%s1802_s0 + $0x50] sm:$0xff] }
   0x8   :  { %401 = vmatpush.bf16.msra.mxu1 %v1373_v9  ;;  %1408 = vmatpush.bf16.msra.mxu3 %v1373_v9  ;;  %v1522_v20 = vld [vmem:[%s1801_s3] ss:$0 sm:$0xff]  ;;  %v1360_v43 = vld [vmem:[%s1802_s0 + $0x58] sm:$0xff]  ;;  %v1362_v59 = vld [vmem:[%s1802_s0 + $0x68] sm:$0xff] }
   0x9   :  { %1109 = vmatmul.msk.bf16.vlgmr.msra.gmra.mxu0 %vm148_vm0, %v1349_v2  ;;  %v1361_v51 = vld [vmem:[%s1802_s0 + $0x60] sm:$0xff]  ;;  %v1382_v0 = vld [vmem:[%s1803_s2 + $0x78] sm:$0xff]  ;;  %v1380_v7 = vld [vmem:[%s1803_s2 + $0x68] sm:$0xff] }
   0xa   :  { %604 = vmatpush.bf16.msra.mxu2 %v1382_v0 }
   0xc   :  { %402 = vmatpush.bf16.msra.mxu1 %v1372_v10  ;;  %1409 = vmatpush.bf16.msra.mxu3 %v1372_v10 }
  0x10   :  { %403 = vmatpush.bf16.msra.mxu1 %v1371_v11  ;;  %1410 = vmatpush.bf16.msra.mxu3 %v1371_v11 }
  0x14   :  { %404 = vmatpush.bf16.msra.mxu1 %v1370_v12  ;;  %1411 = vmatpush.bf16.msra.mxu3 %v1370_v12  ;;  %v1378_v12 = vld [vmem:[%s1803_s2 + $0x58] sm:$0xff] }
  0x18   :  { %405 = vmatpush.bf16.msra.mxu1 %v1369_v14  ;;  %1412 = vmatpush.bf16.msra.mxu3 %v1369_v14 }
  0x19   :  { %1110 = vmatmul.msk.bf16.gmra.mxu0 %vm148_vm0, %v1350_v3 }
  0x1c   :  { %406 = vmatpush.bf16.msra.mxu1 %v1368_v15  ;;  %1413 = vmatpush.bf16.msra.mxu3 %v1368_v15 }
  0x20   :  { %407 = vmatpush.bf16.msra.mxu1 %v1367_v16  ;;  %1414 = vmatpush.bf16.msra.mxu3 %v1367_v16  ;;  %v1377_v16 = vld [vmem:[%s1803_s2 + $0x50] sm:$0xff] }
  0x24   :  { %1415 = vmatpush.bf16.msrb.mxu3 %v1382_v0 }
  0x29   :  { %1111 = vmatmul.msk.bf16.gmra.mxu0 %vm148_vm0, %v1351_v4  ;;  %v1381_v4 = vld [vmem:[%s1803_s2 + $0x70] sm:$0xff] }
  0x2a   :  { %605 = vmatpush.bf16.msra.mxu2 %v1381_v4  ;;  %1416 = vmatpush.bf16.msrb.mxu3 %v1381_v4 }
  0x2e   :  { %606 = vmatpush.bf16.msra.mxu2 %v1380_v7  ;;  %1417 = vmatpush.bf16.msrb.mxu3 %v1380_v7 }
  0x39   :  { %1112 = vmatmul.msk.bf16.gmra.mxu0 %vm148_vm0, %v1352_v5  ;;  %v1363_v5 = vld [vmem:[%s1802_s0 + $0x70] sm:$0xff] }
  0x49   :  { %1113 = vmatmul.msk.bf16.gmra.mxu0 %vm148_vm0, %v1353_v6 }
  0x59   :  { %1114 = vmatmul.msk.bf16.gmra.mxu0 %vm148_vm0, %v1354_v8  ;;  %v1379_v8 = vld [vmem:[%s1803_s2 + $0x60] sm:$0xff] }
  0x5a   :  { %607 = vmatpush.bf16.msra.mxu2 %v1379_v8  ;;  %1418 = vmatpush.bf16.msrb.mxu3 %v1379_v8 }
  0x5e   :  { %608 = vmatpush.bf16.msra.mxu2 %v1378_v12  ;;  %1419 = vmatpush.bf16.msrb.mxu3 %v1378_v12 }
  0x62   :  { %609 = vmatpush.bf16.msra.mxu2 %v1377_v16  ;;  %1420 = vmatpush.bf16.msrb.mxu3 %v1377_v16 }
  0x69   :  { %1115 = vmatmul.msk.bf16.gmra.mxu0 %vm148_vm0, %v1355_v13 }
  0x79   :  { %1116 = vmatmul.msk.bf16.gmra.mxu0 %vm148_vm0, %v1356_v17  ;;  %v1364_v17 = vld [vmem:[%s1802_s0 + $0x78] sm:$0xff] }
  0x86   :  { %v206_v19 = vpop.f32.mrf.mxu0 }
  0x87   :  { %v207_v21 = vadd.f32 %v1522_v20, %v206_v19  ;;  %v1376_v19 = vld [vmem:[%s1803_s2 + $0x48] sm:$0xff] }
  0x88   :  { %610 = vmatpush.bf16.msra.mxu2 %v1376_v19  ;;  %1421 = vmatpush.bf16.msrb.mxu3 %v1376_v19 }
  0x89   :  { %1117 = vmatmul.msk.bf16.gmra.mxu0 %vm148_vm0, %v1357_v18  ;;  %v286_v24 = vmax.f32 %v207_v21, 0.0  ;;  %v1375_v21 = vld [vmem:[%s1803_s2 + $0x40] sm:$0xff] }
  0x8c   :  { %611 = vmatpush.bf16.msra.mxu2 %v1375_v21  ;;  %1422 = vmatpush.bf16.msrb.mxu3 %v1375_v21 }
  0x8e   :  { %v208_v22 = vpop.f32.mrf.mxu0 }
  0x8f   :  { %v209_v23 = vadd.f32 %v1522_v20, %v208_v22 }
  0x91   :  { %v287_v25 = vmax.f32 %v209_v23, 0.0 }
  0x93   :  { %v318_v26 = vpack.c.bf16 %v287_v25, %v286_v24 }
  0x95   :  { %408 = vmatmul.bf16.vlgmr.msra.gmra.mxu1 %v318_v26 }
  0x96   :  { %v211_v28 = vpop.f32.mrf.mxu0 }
  0x97   :  { %v212_v29 = vadd.f32 %v1522_v20, %v211_v28 }
  0x99   :  { %1118 = vmatmul.msk.bf16.gmra.mxu0 %vm148_vm0, %v1358_v27  ;;  %v288_v32 = vmax.f32 %v212_v29, 0.0 }
  0x9e   :  { %v213_v30 = vpop.f32.mrf.mxu0 }
  0x9f   :  { %v214_v31 = vadd.f32 %v1522_v20, %v213_v30 }
  0xa1   :  { %v289_v33 = vmax.f32 %v214_v31, 0.0 }
  0xa3   :  { %v319_v34 = vpack.c.bf16 %v289_v33, %v288_v32 }
  0xa5   :  { %413 = vmatmul.bf16.gmra.mxu1 %v319_v34 }
  0xa6   :  { %v216_v36 = vpop.f32.mrf.mxu0 }
  0xa7   :  { %v217_v37 = vadd.f32 %v1522_v20, %v216_v36  ;;  %v1598_v36 = vld [vmem:[%s1801_s3 + $0x1] ss:$0 sm:$0xff] }
  0xa9   :  { %1119 = vmatmul.msk.bf16.gmra.mxu0 %vm148_vm0, %v1359_v35  ;;  %v290_v40 = vmax.f32 %v217_v37, 0.0 }
  0xae   :  { %v218_v38 = vpop.f32.mrf.mxu0 }
  0xaf   :  { %v219_v39 = vadd.f32 %v1522_v20, %v218_v38 }
  0xb1   :  { %v291_v41 = vmax.f32 %v219_v39, 0.0 }
  0xb3   :  { %v320_v42 = vpack.c.bf16 %v291_v41, %v290_v40 }
  0xb5   :  { %418 = vmatmul.bf16.gmra.mxu1 %v320_v42 }
  0xb6   :  { %v221_v44 = vpop.f32.mrf.mxu0 }
  0xb7   :  { %v222_v45 = vadd.f32 %v1522_v20, %v221_v44 }
  0xb9   :  { %1120 = vmatmul.msk.bf16.gmra.mxu0 %vm148_vm0, %v1360_v43  ;;  %v292_v48 = vmax.f32 %v222_v45, 0.0 }
  0xbe   :  { %v223_v46 = vpop.f32.mrf.mxu0 }
  0xbf   :  { %v224_v47 = vadd.f32 %v1522_v20, %v223_v46 }
  0xc1   :  { %v293_v49 = vmax.f32 %v224_v47, 0.0 }
  0xc3   :  { %v321_v50 = vpack.c.bf16 %v293_v49, %v292_v48 }
  0xc5   :  { %423 = vmatmul.bf16.gmra.mxu1 %v321_v50 }
  0xc6   :  { %v226_v52 = vpop.f32.mrf.mxu0 }
  0xc7   :  { %v227_v53 = vadd.f32 %v1522_v20, %v226_v52 }
  0xc9   :  { %1121 = vmatmul.msk.bf16.gmra.mxu0 %vm148_vm0, %v1361_v51  ;;  %v294_v56 = vmax.f32 %v227_v53, 0.0 }
  0xce   :  { %v228_v54 = vpop.f32.mrf.mxu0 }
  0xcf   :  { %v229_v55 = vadd.f32 %v1522_v20, %v228_v54 }
  0xd1   :  { %v295_v57 = vmax.f32 %v229_v55, 0.0 }
  0xd3   :  { %v322_v58 = vpack.c.bf16 %v295_v57, %v294_v56 }
  0xd5   :  { %428 = vmatmul.bf16.gmra.mxu1 %v322_v58 }
  0xd6   :  { %v231_v60 = vpop.f32.mrf.mxu0 }
  0xd7   :  { %v232_v61 = vadd.f32 %v1522_v20, %v231_v60 }
  0xd9   :  { %1122 = vmatmul.msk.bf16.gmra.mxu0 %vm148_vm0, %v1362_v59  ;;  %v296_v1 = vmax.f32 %v232_v61, 0.0 }
  0xde   :  { %v233_v62 = vpop.f32.mrf.mxu0 }
  0xdf   :  { %v234_v63 = vadd.f32 %v1522_v20, %v233_v62 }
  0xe1   :  { %v297_v2 = vmax.f32 %v234_v63, 0.0 }
  0xe3   :  { %v323_v3 = vpack.c.bf16 %v297_v2, %v296_v1 }
  0xe5   :  { %433 = vmatmul.bf16.gmra.mxu1 %v323_v3 }
  0xe6   :  { %v236_v6 = vpop.f32.mrf.mxu0 }
  0xe7   :  { %v237_v9 = vadd.f32 %v1522_v20, %v236_v6 }
  0xe9   :  { %1123 = vmatmul.msk.bf16.gmra.mxu0 %vm148_vm0, %v1363_v5  ;;  %v298_v13 = vmax.f32 %v237_v9, 0.0 }
  0xee   :  { %v238_v10 = vpop.f32.mrf.mxu0 }
  0xef   :  { %v239_v11 = vadd.f32 %v1522_v20, %v238_v10 }
  0xf1   :  { %v299_v14 = vmax.f32 %v239_v11, 0.0 }
  0xf3   :  { %v324_v15 = vpack.c.bf16 %v299_v14, %v298_v13 }
  0xf5   :  { %438 = vmatmul.bf16.gmra.mxu1 %v324_v15 }
  0xf6   :  { %v241_v18 = vpop.f32.mrf.mxu0 }
  0xf7   :  { %v242_v22 = vadd.f32 %v1522_v20, %v241_v18 }
  0xf9   :  { %1124 = vmatmul.msk.bf16.gmra.mxu0 %vm148_vm0, %v1364_v17  ;;  %v300_v25 = vmax.f32 %v242_v22, 0.0 }
  0xfe   :  { %v243_v23 = vpop.f32.mrf.mxu0 }
  0xff   :  { %v244_v24 = vadd.f32 %v1522_v20, %v243_v23 }
 0x101   :  { %v301_v26 = vmax.f32 %v244_v24, 0.0 }
 0x103   :  { %v325_v27 = vpack.c.bf16 %v301_v26, %v300_v25 }
 0x105   :  { %443 = vmatmul.bf16.gmra.mxu1 %v325_v27 }
 0x106   :  { %v246_v28 = vpop.f32.mrf.mxu0 }
 0x107   :  { %v247_v29 = vadd.f32 %v1522_v20, %v246_v28 }
 0x109   :  { %v302_v32 = vmax.f32 %v247_v29, 0.0 }
 0x10e   :  { %v248_v30 = vpop.f32.mrf.mxu0 }
 0x10f   :  { %v249_v31 = vadd.f32 %v1522_v20, %v248_v30 }
 0x111   :  { %v303_v33 = vmax.f32 %v249_v31, 0.0 }
 0x112   :  { %v409_v34 = vpop.f32.mrf.mxu1 }
 0x113   :  { %v326_v35 = vpack.c.bf16 %v303_v33, %v302_v32  ;;  %v410_v38 = vadd.f32 %v1598_v36, %v409_v34 }
 0x115   :  { %448 = vmatmul.bf16.gmra.mxu1 %v326_v35  ;;  %v489_v41 = vmax.f32 %v410_v38, 0.0 }
 0x116   :  { %v251_v37 = vpop.f32.mrf.mxu0 }
 0x117   :  { %v252_v42 = vadd.f32 %v1522_v20, %v251_v37 }
 0x119   :  { %v304_v47 = vmax.f32 %v252_v42, 0.0 }
 0x11a   :  { %v411_v39 = vpop.f32.mrf.mxu1 }
 0x11b   :  { %v412_v40 = vadd.f32 %v1598_v36, %v411_v39 }
 0x11d   :  { %v490_v43 = vmax.f32 %v412_v40, 0.0 }
 0x11e   :  { %v253_v44 = vpop.f32.mrf.mxu0 }
 0x11f   :  { %v254_v45 = vadd.f32 %v1522_v20, %v253_v44  ;;  %v521_v46 = vpack.c.bf16 %v490_v43, %v489_v41 }
 0x121   :  { %v305_v48 = vmax.f32 %v254_v45, 0.0  ;;  %612 = vmatmul.bf16.vlgmr.msra.gmra.mxu2 %v521_v46 }
 0x122   :  { %v414_v49 = vpop.f32.mrf.mxu1 }
 0x123   :  { %v327_v50 = vpack.c.bf16 %v305_v48, %v304_v47  ;;  %v415_v52 = vadd.f32 %v1598_v36, %v414_v49 }
 0x125   :  { %453 = vmatmul.bf16.gmra.mxu1 %v327_v50  ;;  %v491_v55 = vmax.f32 %v415_v52, 0.0 }
 0x126   :  { %v256_v51 = vpop.f32.mrf.mxu0 }
 0x127   :  { %v257_v56 = vadd.f32 %v1522_v20, %v256_v51 }
 0x129   :  { %v306_v61 = vmax.f32 %v257_v56, 0.0 }
 0x12a   :  { %v416_v53 = vpop.f32.mrf.mxu1 }
 0x12b   :  { %v417_v54 = vadd.f32 %v1598_v36, %v416_v53 }
 0x12d   :  { %v492_v57 = vmax.f32 %v417_v54, 0.0 }
 0x12e   :  { %v258_v58 = vpop.f32.mrf.mxu0 }
 0x12f   :  { %v259_v59 = vadd.f32 %v1522_v20, %v258_v58  ;;  %v522_v60 = vpack.c.bf16 %v492_v57, %v491_v55 }
 0x131   :  { %v307_v62 = vmax.f32 %v259_v59, 0.0  ;;  %617 = vmatmul.bf16.gmra.mxu2 %v522_v60 }
 0x132   :  { %v419_v63 = vpop.f32.mrf.mxu1 }
 0x133   :  { %v328_v0 = vpack.c.bf16 %v307_v62, %v306_v61  ;;  %v420_v2 = vadd.f32 %v1598_v36, %v419_v63 }
 0x135   :  { %458 = vmatmul.bf16.gmra.mxu1 %v328_v0  ;;  %v493_v5 = vmax.f32 %v420_v2, 0.0 }
 0x136   :  { %v261_v1 = vpop.f32.mrf.mxu0 }
 0x137   :  { %v262_v6 = vadd.f32 %v1522_v20, %v261_v1 }
 0x139   :  { %v308_v11 = vmax.f32 %v262_v6, 0.0 }
 0x13a   :  { %v421_v3 = vpop.f32.mrf.mxu1 }
 0x13b   :  { %v422_v4 = vadd.f32 %v1598_v36, %v421_v3 }
 0x13d   :  { %v494_v7 = vmax.f32 %v422_v4, 0.0 }
 0x13e   :  { %v263_v8 = vpop.f32.mrf.mxu0 }
 0x13f   :  { %v264_v9 = vadd.f32 %v1522_v20, %v263_v8  ;;  %v523_v10 = vpack.c.bf16 %v494_v7, %v493_v5 }
 0x141   :  { %v309_v12 = vmax.f32 %v264_v9, 0.0  ;;  %622 = vmatmul.bf16.gmra.mxu2 %v523_v10 }
 0x142   :  { %v424_v13 = vpop.f32.mrf.mxu1 }
 0x143   :  { %v329_v14 = vpack.c.bf16 %v309_v12, %v308_v11  ;;  %v425_v16 = vadd.f32 %v1598_v36, %v424_v13 }
 0x145   :  { %463 = vmatmul.bf16.gmra.mxu1 %v329_v14  ;;  %v495_v19 = vmax.f32 %v425_v16, 0.0 }
 0x146   :  { %v266_v15 = vpop.f32.mrf.mxu0 }
 0x147   :  { %v267_v21 = vadd.f32 %v1522_v20, %v266_v15 }
 0x149   :  { %v310_v26 = vmax.f32 %v267_v21, 0.0 }
 0x14a   :  { %v426_v17 = vpop.f32.mrf.mxu1 }
 0x14b   :  { %v427_v18 = vadd.f32 %v1598_v36, %v426_v17 }
 0x14d   :  { %v496_v22 = vmax.f32 %v427_v18, 0.0 }
 0x14e   :  { %v268_v23 = vpop.f32.mrf.mxu0 }
 0x14f   :  { %v269_v24 = vadd.f32 %v1522_v20, %v268_v23  ;;  %v524_v25 = vpack.c.bf16 %v496_v22, %v495_v19 }
 0x151   :  { %v311_v27 = vmax.f32 %v269_v24, 0.0  ;;  %627 = vmatmul.bf16.gmra.mxu2 %v524_v25 }
 0x152   :  { %v429_v28 = vpop.f32.mrf.mxu1 }
 0x153   :  { %v330_v29 = vpack.c.bf16 %v311_v27, %v310_v26  ;;  %v430_v31 = vadd.f32 %v1598_v36, %v429_v28 }
 0x155   :  { %468 = vmatmul.bf16.gmra.mxu1 %v330_v29  ;;  %v497_v34 = vmax.f32 %v430_v31, 0.0 }
 0x156   :  { %v271_v30 = vpop.f32.mrf.mxu0 }
 0x157   :  { %v272_v35 = vadd.f32 %v1522_v20, %v271_v30 }
 0x159   :  { %v312_v41 = vmax.f32 %v272_v35, 0.0 }
 0x15a   :  { %v431_v32 = vpop.f32.mrf.mxu1 }
 0x15b   :  { %v432_v33 = vadd.f32 %v1598_v36, %v431_v32 }
 0x15d   :  { %v498_v37 = vmax.f32 %v432_v33, 0.0 }
 0x15e   :  { %v273_v38 = vpop.f32.mrf.mxu0 }
 0x15f   :  { %v274_v39 = vadd.f32 %v1522_v20, %v273_v38  ;;  %v525_v40 = vpack.c.bf16 %v498_v37, %v497_v34 }
 0x161   :  { %v313_v42 = vmax.f32 %v274_v39, 0.0  ;;  %632 = vmatmul.bf16.gmra.mxu2 %v525_v40  ;;  %v1639_v40 = vld [vmem:[%s1801_s3 + $0x2] ss:$0 sm:$0xff] }
 0x162   :  { %v434_v43 = vpop.f32.mrf.mxu1 }
 0x163   :  { %v331_v44 = vpack.c.bf16 %v313_v42, %v312_v41  ;;  %v435_v46 = vadd.f32 %v1598_v36, %v434_v43 }
 0x165   :  { %473 = vmatmul.bf16.gmra.mxu1 %v331_v44  ;;  %v499_v49 = vmax.f32 %v435_v46, 0.0 }
 0x166   :  { %v276_v45 = vpop.f32.mrf.mxu0 }
 0x167   :  { %v277_v50 = vadd.f32 %v1522_v20, %v276_v45 }
 0x169   :  { %v314_v55 = vmax.f32 %v277_v50, 0.0 }
 0x16a   :  { %v436_v47 = vpop.f32.mrf.mxu1 }
 0x16b   :  { %v437_v48 = vadd.f32 %v1598_v36, %v436_v47 }
 0x16d   :  { %v500_v51 = vmax.f32 %v437_v48, 0.0 }
 0x16e   :  { %v278_v52 = vpop.f32.mrf.mxu0 }
 0x16f   :  { %v279_v53 = vadd.f32 %v1522_v20, %v278_v52  ;;  %v526_v54 = vpack.c.bf16 %v500_v51, %v499_v49 }
 0x171   :  { %v315_v56 = vmax.f32 %v279_v53, 0.0  ;;  %637 = vmatmul.bf16.gmra.mxu2 %v526_v54 }
 0x172   :  { %v439_v57 = vpop.f32.mrf.mxu1 }
 0x173   :  { %v332_v58 = vpack.c.bf16 %v315_v56, %v314_v55  ;;  %v440_v60 = vadd.f32 %v1598_v36, %v439_v57 }
 0x175   :  { %478 = vmatmul.bf16.vlgmr.msra.gmra.mxu3 %v332_v58  ;;  %v501_v63 = vmax.f32 %v440_v60, 0.0 }
 0x176   :  { %v281_v59 = vpop.f32.mrf.mxu0 }
 0x177   :  { %v282_v0 = vadd.f32 %v1522_v20, %v281_v59 }
 0x179   :  { %v316_v5 = vmax.f32 %v282_v0, 0.0 }
 0x17a   :  { %v441_v61 = vpop.f32.mrf.mxu1 }
 0x17b   :  { %v442_v62 = vadd.f32 %v1598_v36, %v441_v61 }
 0x17d   :  { %v502_v1 = vmax.f32 %v442_v62, 0.0 }
 0x17e   :  { %v283_v2 = vpop.f32.mrf.mxu0 }
 0x17f   :  { %v284_v3 = vadd.f32 %v1522_v20, %v283_v2  ;;  %v527_v4 = vpack.c.bf16 %v502_v1, %v501_v63 }
 0x181   :  { %v317_v6 = vmax.f32 %v284_v3, 0.0  ;;  %642 = vmatmul.bf16.gmra.mxu2 %v527_v4 }
 0x182   :  { %v444_v7 = vpop.f32.mrf.mxu1 }
 0x183   :  { %v333_v8 = vpack.c.bf16 %v317_v6, %v316_v5  ;;  %v445_v9 = vadd.f32 %v1598_v36, %v444_v7 }
 0x185   :  { %483 = vmatmul.bf16.gmra.mxu3 %v333_v8  ;;  %v503_v12 = vmax.f32 %v445_v9, 0.0 }
 0x18a   :  { %v446_v10 = vpop.f32.mrf.mxu1 }
 0x18b   :  { %v447_v11 = vadd.f32 %v1598_v36, %v446_v10 }
 0x18d   :  { %v504_v13 = vmax.f32 %v447_v11, 0.0 }
 0x18f   :  { %v528_v14 = vpack.c.bf16 %v504_v13, %v503_v12 }
 0x191   :  { %647 = vmatmul.bf16.gmra.mxu2 %v528_v14 }
 0x192   :  { %v449_v15 = vpop.f32.mrf.mxu1 }
 0x193   :  { %v450_v16 = vadd.f32 %v1598_v36, %v449_v15 }
 0x195   :  { %v505_v18 = vmax.f32 %v450_v16, 0.0 }
 0x19a   :  { %v451_v20 = vpop.f32.mrf.mxu1 }
 0x19b   :  { %v452_v17 = vadd.f32 %v1598_v36, %v451_v20 }
 0x19d   :  { %v506_v19 = vmax.f32 %v452_v17, 0.0 }
 0x19f   :  { %v529_v21 = vpack.c.bf16 %v506_v19, %v505_v18 }
 0x1a1   :  { %652 = vmatmul.bf16.gmra.mxu2 %v529_v21 }
 0x1a2   :  { %v454_v22 = vpop.f32.mrf.mxu1 }
 0x1a3   :  { %v455_v24 = vadd.f32 %v1598_v36, %v454_v22 }
 0x1a4   :  { %v613_v23 = vpop.f32.mrf.mxu2 }
 0x1a5   :  { %v507_v28 = vmax.f32 %v455_v24, 0.0  ;;  %v614_v43 = vadd.f32 %v1639_v40, %v613_v23 }
 0x1a7   :  { %v693_v46 = vmax.f32 %v614_v43, 0.0 }
 0x1aa   :  { %v456_v25 = vpop.f32.mrf.mxu1 }
 0x1ab   :  { %v457_v26 = vadd.f32 %v1598_v36, %v456_v25 }
 0x1ac   :  { %v615_v27 = vpop.f32.mrf.mxu2 }
 0x1ad   :  { %v508_v29 = vmax.f32 %v457_v26, 0.0  ;;  %v616_v51 = vadd.f32 %v1639_v40, %v615_v27 }
 0x1af   :  { %v530_v30 = vpack.c.bf16 %v508_v29, %v507_v28  ;;  %v694_v57 = vmax.f32 %v616_v51, 0.0 }
 0x1b1   :  { %657 = vmatmul.bf16.gmra.mxu2 %v530_v30 }
 0x1b2   :  { %v459_v31 = vpop.f32.mrf.mxu1 }
 0x1b3   :  { %v460_v33 = vadd.f32 %v1598_v36, %v459_v31 }
 0x1b4   :  { %v618_v32 = vpop.f32.mrf.mxu2 }
 0x1b5   :  { %v509_v38 = vmax.f32 %v460_v33, 0.0  ;;  %v619_v62 = vadd.f32 %v1639_v40, %v618_v32 }
 0x1b7   :  { %v695_v1 = vmax.f32 %v619_v62, 0.0 }
 0x1ba   :  { %v461_v34 = vpop.f32.mrf.mxu1 }
 0x1bb   :  { %v462_v35 = vadd.f32 %v1598_v36, %v461_v34 }
 0x1bc   :  { %v620_v37 = vpop.f32.mrf.mxu2 }
 0x1bd   :  { %v510_v39 = vmax.f32 %v462_v35, 0.0  ;;  %v621_v6 = vadd.f32 %v1639_v40, %v620_v37 }
 0x1bf   :  { %v531_v41 = vpack.c.bf16 %v510_v39, %v509_v38  ;;  %v696_v12 = vmax.f32 %v621_v6, 0.0 }
 0x1c1   :  { %662 = vmatmul.bf16.gmra.mxu2 %v531_v41 }
 0x1c2   :  { %v464_v42 = vpop.f32.mrf.mxu1 }
 0x1c3   :  { %v465_v48 = vadd.f32 %v1598_v36, %v464_v42 }
 0x1c4   :  { %v623_v44 = vpop.f32.mrf.mxu2 }
 0x1c5   :  { %v624_v45 = vadd.f32 %v1639_v40, %v623_v44  ;;  %v511_v54 = vmax.f32 %v465_v48, 0.0 }
 0x1c7   :  { %v697_v47 = vmax.f32 %v624_v45, 0.0 }
 0x1c9   :  { %v725_v49 = vmax.f32 %v693_v46, %v697_v47 }
 0x1ca   :  { %v466_v50 = vpop.f32.mrf.mxu1 }
 0x1cb   :  { %v467_v52 = vadd.f32 %v1598_v36, %v466_v50 }
 0x1cc   :  { %v625_v53 = vpop.f32.mrf.mxu2 }
 0x1cd   :  { %v512_v55 = vmax.f32 %v467_v52, 0.0  ;;  %v626_v56 = vadd.f32 %v1639_v40, %v625_v53 }
 0x1cf   :  { %v698_v58 = vmax.f32 %v626_v56, 0.0  ;;  %v532_v59 = vpack.c.bf16 %v512_v55, %v511_v54 }
 0x1d1   :  { %v726_v60 = vmax.f32 %v694_v57, %v698_v58  ;;  %667 = vmatmul.bf16.gmra.mxu2 %v532_v59 }
 0x1d2   :  { %v469_v61 = vpop.f32.mrf.mxu1 }
 0x1d3   :  { %v470_v3 = vadd.f32 %v1598_v36, %v469_v61 }
 0x1d4   :  { %v628_v63 = vpop.f32.mrf.mxu2 }
 0x1d5   :  { %v629_v0 = vadd.f32 %v1639_v40, %v628_v63  ;;  %v513_v9 = vmax.f32 %v470_v3, 0.0 }
 0x1d7   :  { %v699_v2 = vmax.f32 %v629_v0, 0.0 }
 0x1d9   :  { %v727_v4 = vmax.f32 %v695_v1, %v699_v2 }
 0x1da   :  { %v471_v5 = vpop.f32.mrf.mxu1 }
 0x1db   :  { %v472_v7 = vadd.f32 %v1598_v36, %v471_v5 }
 0x1dc   :  { %v630_v8 = vpop.f32.mrf.mxu2 }
 0x1dd   :  { %v514_v10 = vmax.f32 %v472_v7, 0.0  ;;  %v631_v11 = vadd.f32 %v1639_v40, %v630_v8 }
 0x1df   :  { %v533_v13 = vpack.c.bf16 %v514_v10, %v513_v9  ;;  %v700_v14 = vmax.f32 %v631_v11, 0.0  ;;  %v1390_v11 = vld [vmem:[%s1803_s2 + $0xb8] sm:$0xff] }
 0x1e0   :  { %826 = vmatpush.bf16.msra.mxu3 %v1390_v11 }
 0x1e1   :  { %v728_v15 = vmax.f32 %v696_v12, %v700_v14  ;;  %672 = vmatmul.bf16.gmra.mxu2 %v533_v13  ;;  %v1389_v13 = vld [vmem:[%s1803_s2 + $0xb0] sm:$0xff]  ;;  %v1388_v14 = vld [vmem:[%s1803_s2 + $0xa8] sm:$0xff] }
 0x1e2   :  { %v474_v16 = vpop.f32.mrf.mxu1 }
 0x1e3   :  { %v475_v19 = vadd.f32 %v1598_v36, %v474_v16 }
 0x1e4   :  { %v633_v20 = vpop.f32.mrf.mxu2  ;;  %827 = vmatpush.bf16.msra.mxu3 %v1389_v13 }
 0x1e5   :  { %v634_v17 = vadd.f32 %v1639_v40, %v633_v20  ;;  %v515_v25 = vmax.f32 %v475_v19, 0.0  ;;  %v1386_v20 = vld [vmem:[%s1803_s2 + $0x98] sm:$0xff]  ;;  %v1384_v19 = vld [vmem:[%s1803_s2 + $0x88] sm:$0xff] }
 0x1e7   :  { %v701_v18 = vmax.f32 %v634_v17, 0.0  ;;  %v1385_v17 = vld [vmem:[%s1803_s2 + $0x90] sm:$0xff] }
 0x1e8   :  { %828 = vmatpush.bf16.msra.mxu3 %v1388_v14 }
 0x1e9   :  { %v729_v21 = vmax.f32 %v725_v49, %v701_v18 }
 0x1ea   :  { %v476_v22 = vpop.f32.mrf.mxu1 }
 0x1eb   :  { %v477_v23 = vadd.f32 %v1598_v36, %v476_v22 }
 0x1ec   :  { %v635_v24 = vpop.f32.mrf.mxu2 }
 0x1ed   :  { %v516_v26 = vmax.f32 %v477_v23, 0.0  ;;  %v636_v27 = vadd.f32 %v1639_v40, %v635_v24 }
 0x1ef   :  { %v534_v28 = vpack.c.bf16 %v516_v26, %v515_v25  ;;  %v702_v29 = vmax.f32 %v636_v27, 0.0 }
 0x1f1   :  { %v730_v30 = vmax.f32 %v726_v60, %v702_v29  ;;  %677 = vmatmul.bf16.gmra.mxu2 %v534_v28 }
 0x1f4   :  { %v638_v31 = vpop.f32.mrf.mxu2 }
 0x1f5   :  { %v639_v32 = vadd.f32 %v1639_v40, %v638_v31 }
 0x1f7   :  { %v703_v33 = vmax.f32 %v639_v32, 0.0 }
 0x1f8   :  { %v479_v34 = vpop.f32.mrf.mxu3 }
 0x1f9   :  { %v731_v35 = vmax.f32 %v727_v4, %v703_v33  ;;  %v480_v39 = vadd.f32 %v1598_v36, %v479_v34 }
 0x1fb   :  { %v517_v45 = vmax.f32 %v480_v39, 0.0 }
 0x1fc   :  { %v640_v37 = vpop.f32.mrf.mxu2 }
 0x1fd   :  { %v641_v38 = vadd.f32 %v1639_v40, %v640_v37  ;;  %v1398_v37 = vld [vmem:[%s1803_s2 + $0xf8] sm:$0xff] }
 0x1ff   :  { %v704_v41 = vmax.f32 %v641_v38, 0.0 }
 0x200   :  { %v481_v42 = vpop.f32.mrf.mxu3 }
 0x201   :  { %v732_v43 = vmax.f32 %v728_v15, %v704_v41  ;;  %v482_v44 = vadd.f32 %v1598_v36, %v481_v42  ;;  %v1387_v15 = vld [vmem:[%s1803_s2 + $0xa0] sm:$0xff] }
 0x202   :  { %829 = vmatpush.bf16.msra.mxu3 %v1387_v15 }
 0x203   :  { %v518_v46 = vmax.f32 %v482_v44, 0.0 }
 0x204   :  { %v643_v47 = vpop.f32.mrf.mxu2 }
 0x205   :  { %v535_v48 = vpack.c.bf16 %v518_v46, %v517_v45  ;;  %v644_v49 = vadd.f32 %v1639_v40, %v643_v47 }
 0x206   :  { %830 = vmatpush.bf16.msra.mxu3 %v1386_v20 }
 0x207   :  { %v705_v50 = vmax.f32 %v644_v49, 0.0  ;;  %682 = vmatmul.bf16.vlgmr.msrb.gmra.mxu3 %v535_v48 }
 0x208   :  { %v484_v51 = vpop.f32.mrf.mxu3 }
 0x209   :  { %v733_v52 = vmax.f32 %v729_v21, %v705_v50  ;;  %v485_v55 = vadd.f32 %v1598_v36, %v484_v51  ;;  %v1383_v21 = vld [vmem:[%s1803_s2 + $0x80] sm:$0xff]  ;;  %v1396_v50 = vld [vmem:[%s1803_s2 + $0xe8] sm:$0xff] }
 0x20a   :  { %831 = vmatpush.bf16.msra.mxu3 %v1385_v17 }
 0x20b   :  { %v519_v60 = vmax.f32 %v485_v55, 0.0 }
 0x20c   :  { %v645_v53 = vpop.f32.mrf.mxu2 }
 0x20d   :  { %v646_v54 = vadd.f32 %v1639_v40, %v645_v53 }
 0x20e   :  { %832 = vmatpush.bf16.msra.mxu3 %v1384_v19 }
 0x20f   :  { %v706_v56 = vmax.f32 %v646_v54, 0.0 }
 0x210   :  { %v486_v57 = vpop.f32.mrf.mxu3 }
 0x211   :  { %v1664_v58 = vmax.f32 %v730_v30, %v706_v56  ;;  %v487_v59 = vadd.f32 %v1598_v36, %v486_v57 }
 0x212   :  { %833 = vmatpush.bf16.msra.mxu3 %v1383_v21 }
 0x213   :  { %v520_v61 = vmax.f32 %v487_v59, 0.0  ;;  %v1395_v59 = vld [vmem:[%s1803_s2 + $0xe0] sm:$0xff] }
 0x214   :  { %v648_v62 = vpop.f32.mrf.mxu2 }
 0x215   :  { %v649_v63 = vadd.f32 %v1639_v40, %v648_v62  ;;  %v536_v0 = vpack.c.bf16 %v520_v61, %v519_v60 }
 0x216   :  { %918 = vmatpush.bf16.msrb.mxu3 %v1398_v37  ;;  %v1402_v37 = vld [vmem:[%s1803_s2 + $0x118] sm:$0xff] }
 0x217   :  { %v707_v1 = vmax.f32 %v649_v63, 0.0  ;;  %687 = vmatmul.bf16.gmra.mxu3 %v536_v0 }
 0x219   :  { %v1668_v2 = vmax.f32 %v731_v35, %v707_v1 }
 0x21c   :  { %v650_v3 = vpop.f32.mrf.mxu2 }
 0x21d   :  { %v651_v4 = vadd.f32 %v1639_v40, %v650_v3  ;;  %v1394_v3 = vld [vmem:[%s1803_s2 + $0xd8] sm:$0xff] }
 0x21f   :  { %v708_v5 = vmax.f32 %v651_v4, 0.0 }
 0x221   :  { %v1671_v6 = vmax.f32 %v732_v43, %v708_v5  ;;  %v1397_v43 = vld [vmem:[%s1803_s2 + $0xf0] sm:$0xff] }
 0x222   :  { %919 = vmatpush.bf16.msrb.mxu3 %v1397_v43 }
 0x224   :  { %v653_v7 = vpop.f32.mrf.mxu2 }
 0x225   :  { %v654_v23 = vadd.f32 %v1639_v40, %v653_v7 }
 0x226   :  { %920 = vmatpush.bf16.msrb.mxu3 %v1396_v50  ;;  %v1427_v50 = vld [vmem:[%s1801_s3 + $0x4] ss:$0 sm:$0xff] }
 0x227   :  { %v709_v25 = vmax.f32 %v654_v23, 0.0  ;;  %v1392_v23 = vld [vmem:[%s1803_s2 + $0xc8] sm:$0xff] }
 0x229   :  { %v737_v29 = vmax.f32 %v733_v52, %v709_v25 }
 0x22a   :  { %921 = vmatpush.bf16.msrb.mxu3 %v1395_v59 }
 0x22c   :  { %v655_v8 = vpop.f32.mrf.mxu2 }
 0x22d   :  { %v656_v30 = vadd.f32 %v1639_v40, %v655_v8 }
 0x22e   :  { %922 = vmatpush.bf16.msrb.mxu3 %v1394_v3 }
 0x22f   :  { %v710_v38 = vmax.f32 %v656_v30, 0.0 }
 0x231   :  { %v738_v47 = vmax.f32 %v1664_v58, %v710_v38 }
 0x234   :  { %v658_v9 = vpop.f32.mrf.mxu2 }
 0x235   :  { %v659_v48 = vadd.f32 %v1639_v40, %v658_v9 }
 0x237   :  { %v711_v55 = vmax.f32 %v659_v48, 0.0  ;;  %v1399_v48 = vld [vmem:[%s1803_s2 + $0x100] sm:$0xff] }
 0x239   :  { %v739_v62 = vmax.f32 %v1668_v2, %v711_v55 }
 0x23c   :  { %v1673_v36 = vpop.f32.mrf.mxu2 }
 0x23d   :  { %v661_v63 = vadd.f32 %v1639_v40, %v1673_v36 }
 0x23f   :  { %v712_v9 = vmax.f32 %v661_v63, 0.0 }
 0x241   :  { %v740_v14 = vmax.f32 %v1671_v6, %v712_v9  ;;  %v1393_v6 = vld [vmem:[%s1803_s2 + $0xd0] sm:$0xff] }
 0x242   :  { %923 = vmatpush.bf16.msrb.mxu3 %v1393_v6 }
 0x244   :  { %v663_v10 = vpop.f32.mrf.mxu2 }
 0x245   :  { %v664_v24 = vadd.f32 %v1639_v40, %v663_v10 }
 0x246   :  { %924 = vmatpush.bf16.msrb.mxu3 %v1392_v23 }
 0x247   :  { %v713_v28 = vmax.f32 %v664_v24, 0.0  ;;  %v1406_v24 = vld [vmem:[%s1803_s2 + $0x138] sm:$0xff] }
 0x249   :  { %v741_v33 = vmax.f32 %v737_v29, %v713_v28  ;;  %v1404_v28 = vld [vmem:[%s1803_s2 + $0x128] sm:$0xff] }
 0x24c   :  { %v665_v12 = vpop.f32.mrf.mxu2 }
 0x24d   :  { %v666_v34 = vadd.f32 %v1639_v40, %v665_v12 }
 0x24f   :  { %v714_v44 = vmax.f32 %v666_v34, 0.0 }
 0x251   :  { %v742_v52 = vmax.f32 %v738_v47, %v714_v44  ;;  %v1400_v47 = vld [vmem:[%s1803_s2 + $0x108] sm:$0xff] }
 0x254   :  { %v668_v16 = vpop.f32.mrf.mxu2 }
 0x255   :  { %v669_v53 = vadd.f32 %v1639_v40, %v668_v16 }
 0x257   :  { %v715_v60 = vmax.f32 %v669_v53, 0.0 }
 0x259   :  { %v743_v7 = vmax.f32 %v739_v62, %v715_v60 }
 0x25c   :  { %v670_v18 = vpop.f32.mrf.mxu2 }
 0x25d   :  { %v671_v8 = vadd.f32 %v1639_v40, %v670_v18 }
 0x25f   :  { %v716_v12 = vmax.f32 %v671_v8, 0.0 }
 0x261   :  { %v744_v20 = vmax.f32 %v740_v14, %v716_v12 }
 0x264   :  { %v673_v22 = vpop.f32.mrf.mxu2 }
 0x265   :  { %v674_v26 = vadd.f32 %v1639_v40, %v673_v22 }
 0x267   :  { %v717_v31 = vmax.f32 %v674_v26, 0.0  ;;  %v1405_v26 = vld [vmem:[%s1803_s2 + $0x130] sm:$0xff] }
 0x269   :  { %v745_v39 = vmax.f32 %v741_v33, %v717_v31 }
 0x26c   :  { %v675_v27 = vpop.f32.mrf.mxu2 }
 0x26d   :  { %v676_v41 = vadd.f32 %v1639_v40, %v675_v27  ;;  %v1426_v27 = vld [vmem:[%s1801_s3 + $0x3] ss:$0 sm:$0xff] }
 0x26f   :  { %v718_v49 = vmax.f32 %v676_v41, 0.0 }
 0x271   :  { %v746_v56 = vmax.f32 %v742_v52, %v718_v49 }
 0x274   :  { %v678_v46 = vpop.f32.mrf.mxu2 }
 0x275   :  { %v679_v57 = vadd.f32 %v1639_v40, %v678_v46  ;;  %v1401_v46 = vld [vmem:[%s1803_s2 + $0x110] sm:$0xff] }
 0x277   :  { %v719_v0 = vmax.f32 %v679_v57, 0.0 }
 0x279   :  { %v747_v36 = vmax.f32 %v743_v7, %v719_v0  ;;  %v1428_v0 = vld [vmem:[%s1801_s3 + $0x5] ss:$0 sm:$0xff] }
 0x27c   :  { %v680_v4 = vpop.f32.mrf.mxu2 }
 0x27d   :  { %v681_v10 = vadd.f32 %v1639_v40, %v680_v4 }
 0x27f   :  { %v720_v15 = vmax.f32 %v681_v10, 0.0 }
 0x281   :  { %v748_v18 = vmax.f32 %v744_v20, %v720_v15 }
 0x28a   :  { %v683_v32 = vpop.f32.mrf.mxu3 }
 0x28b   :  { %v684_v35 = vadd.f32 %v1639_v40, %v683_v32  ;;  %v1403_v32 = vld [vmem:[%s1803_s2 + $0x120] sm:$0xff] }
 0x28d   :  { %v721_v42 = vmax.f32 %v684_v35, 0.0 }
 0x28f   :  { %v749_v45 = vmax.f32 %v745_v39, %v721_v42 }
 0x291   :  { %753 = vst [vmem:[%s1804_s4] sm:$0xff] %v749_v45 }
 0x292   :  { %v685_v51 = vpop.f32.mrf.mxu3 }
 0x293   :  { %v686_v54 = vadd.f32 %v1639_v40, %v685_v51 }
 0x295   :  { %v722_v58 = vmax.f32 %v686_v54, 0.0 }
 0x297   :  { %v750_v61 = vmax.f32 %v746_v56, %v722_v58 }
 0x299   :  { %754 = vst [vmem:[%s1804_s4 + $0x8] sm:$0xff] %v750_v61  ;;  %v757_v1 = vpack.c.bf16 %v750_v61, %v749_v45 }
 0x29a   :  { %v688_v5 = vpop.f32.mrf.mxu3 }
 0x29b   :  { %v689_v2 = vadd.f32 %v1639_v40, %v688_v5  ;;  %834 = vmatmul.bf16.vlgmr.msra.gmra.mxu3 %v757_v1 }
 0x29d   :  { %v723_v11 = vmax.f32 %v689_v2, 0.0 }
 0x29f   :  { %v751_v13 = vmax.f32 %v747_v36, %v723_v11 }
 0x2a1   :  { %755 = vst [vmem:[%s1804_s4 + $0x10] sm:$0xff] %v751_v13 }
 0x2a2   :  { %v690_v16 = vpop.f32.mrf.mxu3 }
 0x2a3   :  { %v691_v17 = vadd.f32 %v1639_v40, %v690_v16  ;;  %v1391_v40 = vld [vmem:[%s1803_s2 + $0xc0] sm:$0xff] }
 0x2a4   :  { %925 = vmatpush.bf16.msrb.mxu3 %v1391_v40 }
 0x2a5   :  { %v724_v19 = vmax.f32 %v691_v17, 0.0 }
 0x2a7   :  { %v752_v21 = vmax.f32 %v748_v18, %v724_v19 }
 0x2a8   :  { %1010 = vmatpush.bf16.msra.mxu3 %v1406_v24 }
 0x2a9   :  { %756 = vst [vmem:[%s1804_s4 + $0x18] sm:$0xff] %v752_v21  ;;  %v758_v22 = vpack.c.bf16 %v752_v21, %v751_v13 }
 0x2ab   :  { %839 = vmatmul.bf16.gmra.mxu3 %v758_v22 }
 0x2ac   :  { %1011 = vmatpush.bf16.msra.mxu3 %v1405_v26 }
 0x2b0   :  { %1012 = vmatpush.bf16.msra.mxu3 %v1404_v28 }
 0x2b4   :  { %1013 = vmatpush.bf16.msra.mxu3 %v1403_v32 }
 0x2b8   :  { %1014 = vmatpush.bf16.msra.mxu3 %v1402_v37 }
 0x2bc   :  { %1015 = vmatpush.bf16.msra.mxu3 %v1401_v46 }
 0x2c0   :  { %1016 = vmatpush.bf16.msra.mxu3 %v1400_v47 }
 0x2c4   :  { %1017 = vmatpush.bf16.msra.mxu3 %v1399_v48 }
 0x31e   :  { %v835_v25 = vpop.f32.mrf.mxu3 }
 0x31f   :  { %v836_v29 = vadd.f32 %v1426_v27, %v835_v25 }
 0x321   :  { %v845_v33 = vmax.f32 %v836_v29, 0.0 }
 0x326   :  { %v837_v30 = vpop.f32.mrf.mxu3 }
 0x327   :  { %v838_v31 = vadd.f32 %v1426_v27, %v837_v30 }
 0x329   :  { %v846_v34 = vmax.f32 %v838_v31, 0.0 }
 0x32b   :  { %v849_v35 = vpack.c.bf16 %v846_v34, %v845_v33 }
 0x32d   :  { %926 = vmatmul.bf16.vlgmr.msrb.gmra.mxu3 %v849_v35 }
 0x32e   :  { %v840_v38 = vpop.f32.mrf.mxu3 }
 0x32f   :  { %v841_v39 = vadd.f32 %v1426_v27, %v840_v38 }
 0x331   :  { %v847_v43 = vmax.f32 %v841_v39, 0.0 }
 0x336   :  { %v842_v41 = vpop.f32.mrf.mxu3 }
 0x337   :  { %v843_v42 = vadd.f32 %v1426_v27, %v842_v41 }
 0x339   :  { %v848_v44 = vmax.f32 %v843_v42, 0.0 }
 0x33b   :  { %v850_v45 = vpack.c.bf16 %v848_v44, %v847_v43 }
 0x33d   :  { %931 = vmatmul.bf16.gmra.mxu3 %v850_v45 }
 0x3b0   :  { %v927_v49 = vpop.f32.mrf.mxu3 }
 0x3b1   :  { %v928_v51 = vadd.f32 %v1427_v50, %v927_v49 }
 0x3b3   :  { %v937_v54 = vmax.f32 %v928_v51, 0.0 }
 0x3b8   :  { %v929_v52 = vpop.f32.mrf.mxu3 }
 0x3b9   :  { %v930_v53 = vadd.f32 %v1427_v50, %v929_v52 }
 0x3bb   :  { %v938_v55 = vmax.f32 %v930_v53, 0.0 }
 0x3bd   :  { %v941_v56 = vpack.c.bf16 %v938_v55, %v937_v54 }
 0x3bf   :  { %1018 = vmatmul.bf16.vlgmr.msra.gmra.mxu3 %v941_v56 }
 0x3c0   :  { %v932_v57 = vpop.f32.mrf.mxu3 }
 0x3c1   :  { %v933_v58 = vadd.f32 %v1427_v50, %v932_v57 }
 0x3c3   :  { %v939_v61 = vmax.f32 %v933_v58, 0.0 }
 0x3c8   :  { %v934_v59 = vpop.f32.mrf.mxu3 }
 0x3c9   :  { %v935_v60 = vadd.f32 %v1427_v50, %v934_v59 }
 0x3cb   :  { %v940_v62 = vmax.f32 %v935_v60, 0.0 }
 0x3cd   :  { %v942_v63 = vpack.c.bf16 %v940_v62, %v939_v61 }
 0x3cf   :  { %1023 = vmatmul.bf16.gmra.mxu3 %v942_v63 }
 0x442   :  { %v1019_v1 = vpop.f32.mrf.mxu3 }
 0x443   :  { %v1020_v3 = vadd.f32 %v1428_v0, %v1019_v1 }
 0x445   :  { %1029 = vst [vmem:[%s1804_s4 + $0x20] sm:$0xff] %v1020_v3 }
 0x44a   :  { %v1021_v4 = vpop.f32.mrf.mxu3 }
 0x44b   :  { %v1022_v5 = vadd.f32 %v1428_v0, %v1021_v4 }
 0x44d   :  { %1030 = vst [vmem:[%s1804_s4 + $0x28] sm:$0xff] %v1022_v5 }
 0x452   :  { %v1024_v7 = vpop.f32.mrf.mxu3 }
 0x453   :  { %v1025_v8 = vadd.f32 %v1428_v0, %v1024_v7 }
 0x455   :  { %1031 = vst [vmem:[%s1804_s4 + $0x30] sm:$0xff] %v1025_v8 }
 0x45a   :  { %v1026_v2 = vpop.f32.mrf.mxu3 }
 0x45b   :  { %v1027_v9 = vadd.f32 %v1428_v0, %v1026_v2 }
 0x45d   :  { %1032 = vst [vmem:[%s1804_s4 + $0x38] sm:$0xff] %v1027_v9 }

</bundles_post_ra>
